<compile_context>
chip_gen: v7x
topology: tpu7x:2x2x1
jax: 0.10.0
libtpu: 0.0.40
codegen_flags: <defaults>
</compile_context>

<pallas_src>
import functools

import jax
import jax.numpy as jnp
from jax.experimental import pallas as pl
from jax.experimental.pallas import tpu as pltpu

ALPHA = 0.25
GAMMA = 2.0
LANES = 128
SUBLANES = 8
MAX_BLOCK_ROWS = 2048  # (2048,128) f32 tile = 1 MiB per pipeline buffer


def _focal_loss_math(x, z, alpha, gamma):
    """Per-element focal loss; x/z are float32 vreg slabs."""
    is_pos = z == 1.0
    alpha_w = jnp.where(is_pos, alpha, 1.0 - alpha)

    # One shared exp(-|x|) feeds both sigmoid(x) and the stable BCE-with-logits.
    e = jnp.exp(-jnp.abs(x))                     # EUP exp
    r = pl.reciprocal(1.0 + e, approx=False)     # EUP reciprocal
    p = jnp.where(x >= 0.0, r, e * r)            # sigmoid(x)
    pt = jnp.where(is_pos, p, 1.0 - p)
    # BCEWithLogitsLoss(reduction='none'): max(x,0) - x*z + log1p(exp(-|x|))
    ce = jnp.maximum(x, 0.0) - x * z + jnp.log1p(e)   # EUP log1p

    one_m_pt = 1.0 - pt
    g = float(gamma)
    if g == 2.0:
        mod = one_m_pt * one_m_pt                # explicit square, no pow on EUP
    elif g == int(g) and 0.0 <= g <= 4.0:
        mod = jnp.ones_like(one_m_pt)
        for _ in range(int(g)):
            mod = mod * one_m_pt
    else:
        mod = jnp.power(one_m_pt, g)

    return alpha_w * mod * ce


def _focal_loss_reduce_kernel(x_ref, z_ref, out_ref, acc_ref, *, alpha, gamma):
    j = pl.program_id(1)

    @pl.when(j == 0)
    def _():
        acc_ref[...] = jnp.zeros_like(acc_ref)

    x = x_ref[...].astype(jnp.float32)   # logits
    z = z_ref[...].astype(jnp.float32)   # labels (0/1)
    loss = _focal_loss_math(x, z, alpha, gamma)

    # Fold the block's partial sum into an (8,128) vreg-shaped accumulator:
    # pure VPU adds; the single cross-lane reduce happens once, in the wrapper.
    rows, cols = loss.shape
    acc_ref[...] += jnp.sum(loss.reshape(rows // SUBLANES, SUBLANES, cols), axis=0)

    @pl.when(j == pl.num_programs(1) - 1)
    def _():
        out_ref[...] = acc_ref[...]


def _focal_loss_elementwise_kernel(x_ref, z_ref, out_ref, *, alpha, gamma):
    x = x_ref[...].astype(jnp.float32)
    z = z_ref[...].astype(jnp.float32)
    out_ref[...] = _focal_loss_math(x, z, alpha, gamma)


def _pad_to_slab(arr, padded_rows, pad_value):
    """Single pad pass: ravel -> pad with a zero-loss sentinel -> (rows, 128)."""
    n = arr.size
    pad = padded_rows * LANES - n
    return jnp.pad(jnp.ravel(arr), (0, pad),
                   constant_values=pad_value).reshape(padded_rows, LANES)


def focal_loss_v1(logits, label, alpha=ALPHA, gamma=GAMMA, reduction='mean'):
    """Pallas TPU implementation of FocalLossV1.forward."""
    assert logits.shape == label.shape

    n = int(logits.size)
    rows = -(-n // LANES)
    block_rows = min(MAX_BLOCK_ROWS, -(-rows // SUBLANES) * SUBLANES)
    blocks_total = -(-rows // block_rows)
    kernel_kwargs = dict(alpha=float(alpha), gamma=float(gamma))

    if reduction in ('mean', 'sum'):
        n_splits = 2 if blocks_total >= 2 else 1   # 2-TC split; harmless on 1-TC chips
        blocks_per_split = -(-blocks_total // n_splits)
        padded_rows = n_splits * blocks_per_split * block_rows

        # Pad logits with a large negative value and labels with 0 so padded
        # elements contribute (numerically) zero loss -> no in-kernel mask.
        x = _pad_to_slab(logits, padded_rows, -30.0)
        z = _pad_to_slab(label, padded_rows, 0)

        kernel = functools.partial(_focal_loss_reduce_kernel, **kernel_kwargs)
        partials = pl.pallas_call(
            kernel,
            out_shape=jax.ShapeDtypeStruct((n_splits * SUBLANES, LANES), jnp.float32),
            grid_spec=pltpu.PrefetchScalarGridSpec(
                num_scalar_prefetch=0,
                grid=(n_splits, blocks_per_split),
                in_specs=[
                    pl.BlockSpec((block_rows, LANES),
                                 lambda i, j: (i * blocks_per_split + j, 0)),
                    pl.BlockSpec((block_rows, LANES),
                                 lambda i, j: (i * blocks_per_split + j, 0)),
                ],
                out_specs=pl.BlockSpec((SUBLANES, LANES), lambda i, j: (i, 0)),
                scratch_shapes=[pltpu.VMEM((SUBLANES, LANES), jnp.float32)],
            ),
            compiler_params=pltpu.CompilerParams(
                dimension_semantics=("parallel", "arbitrary")),
        )(x, z)

        total = jnp.sum(partials)
        if reduction == 'mean':
            total = total / jnp.float32(n)
        return total

    # Any other reduction (e.g. 'none'): return the un-reduced per-element
    # loss at the input shape, float32 (matches the PyTorch module).
    padded_rows = blocks_total * block_rows
    x = _pad_to_slab(logits, padded_rows, -30.0)
    z = _pad_to_slab(label, padded_rows, 0)

    kernel = functools.partial(_focal_loss_elementwise_kernel, **kernel_kwargs)
    out = pl.pallas_call(
        kernel,
        out_shape=jax.ShapeDtypeStruct((padded_rows, LANES), jnp.float32),
        grid_spec=pltpu.PrefetchScalarGridSpec(
            num_scalar_prefetch=0,
            grid=(blocks_total,),
            in_specs=[
                pl.BlockSpec((block_rows, LANES), lambda i: (i, 0)),
                pl.BlockSpec((block_rows, LANES), lambda i: (i, 0)),
            ],
            out_specs=pl.BlockSpec((block_rows, LANES), lambda i: (i, 0)),
        ),
        compiler_params=pltpu.CompilerParams(
            dimension_semantics=("parallel",)),
    )(x, z)
    return jnp.ravel(out)[:n].reshape(logits.shape)


def _reference_focal_loss(logits, label, alpha=ALPHA, gamma=GAMMA, reduction='mean'):
    x = logits.astype(jnp.float32)
    z = label.astype(jnp.float32)
    a = jnp.where(z == 1.0, alpha, 1.0 - alpha)
    probs = jax.nn.sigmoid(x)
    pt = jnp.where(z == 1.0, probs, 1.0 - probs)
    ce = jnp.maximum(x, 0.0) - x * z + jnp.log1p(jnp.exp(-jnp.abs(x)))
    loss = a * jnp.power(1.0 - pt, gamma) * ce
    if reduction == 'mean':
        return jnp.mean(loss)
    if reduction == 'sum':
        return jnp.sum(loss)
    return loss


if __name__ == "__main__":
    key = jax.random.PRNGKey(0)
    k1, k2 = jax.random.split(key)
    # NCHW: batch=2, channels=4, spatial=16x16
    logits = jax.random.normal(k1, (2, 4, 16, 16), dtype=jnp.float32)
    label = jax.random.bernoulli(k2, 0.3, (2, 4, 16, 16)).astype(jnp.float32)

    out_mean = jax.block_until_ready(focal_loss_v1(logits, label, reduction='mean'))
    ref_mean = _reference_focal_loss(logits, label, reduction='mean')
    assert jnp.allclose(out_mean, ref_mean, atol=1e-5, rtol=1e-5), (out_mean, ref_mean)

    out_sum = jax.block_until_ready(focal_loss_v1(logits, label, reduction='sum'))
    ref_sum = _reference_focal_loss(logits, label, reduction='sum')
    assert jnp.allclose(out_sum, ref_sum, atol=1e-4, rtol=1e-5), (out_sum, ref_sum)

    out_none = jax.block_until_ready(focal_loss_v1(logits, label, reduction='none'))
    ref_none = _reference_focal_loss(logits, label, reduction='none')
    assert out_none.shape == logits.shape
    assert jnp.allclose(out_none, ref_none, atol=1e-6, rtol=1e-5), "elementwise mismatch"

    print("KERNEL_OK")
</pallas_src>

<mosaic_0001>
module attributes {stable_mosaic.version = 11 : i64} {
  func.func @_focal_loss_reduce_kernel(%arg0: i32, %arg1: i32, %arg2: memref<16x128xf32, #tpu.memory_space<vmem>>, %arg3: memref<16x128xf32, #tpu.memory_space<vmem>>, %arg4: memref<8x128xf32, #tpu.memory_space<vmem>>, %arg5: memref<8x128xf32, #tpu.memory_space<vmem>>) attributes {dimension_semantics = [#tpu.dimension_semantics<parallel>, #tpu.dimension_semantics<arbitrary>], iteration_bounds = array<i64: 1, 1>, scalar_prefetch = 0 : i64, scratch_operands = 1 : i64, tpu.core_type = #tpu.core_type<tc>, window_params = [{transform_indices = @transform_0, window_bounds = array<i64: 16, 128>}, {transform_indices = @transform_1, window_bounds = array<i64: 16, 128>}, {transform_indices = @transform_2, window_bounds = array<i64: 8, 128>}]} {
    %c0_i32 = arith.constant 0 : i32
    %0 = arith.cmpi eq, %arg1, %c0_i32 : i32
    %1 = arith.extui %0 : i1 to i32
    %c0_i32_0 = arith.constant 0 : i32
    %2 = arith.cmpi ne, %1, %c0_i32_0 : i32
    scf.if %2 {
      %cst_19 = arith.constant 0.000000e+00 : f32
      %43 = vector.broadcast %cst_19 : f32 to vector<8x128xf32>
      %c0_20 = arith.constant 0 : index
      %c0_21 = arith.constant 0 : index
      %44 = vector.load %arg5[%c0_20, %c0_21] : memref<8x128xf32, #tpu.memory_space<vmem>>, vector<8x128xf32>
      tpu.vector_store %arg5[%c0_20, %c0_21], %43 {strides = array<i32>} : memref<8x128xf32, #tpu.memory_space<vmem>>, vector<8x128xf32>,
    } else {
    }
    %c0 = arith.constant 0 : index
    %c0_1 = arith.constant 0 : index
    %3 = vector.load %arg2[%c0, %c0_1] : memref<16x128xf32, #tpu.memory_space<vmem>>, vector<16x128xf32>
    %c0_2 = arith.constant 0 : index
    %c0_3 = arith.constant 0 : index
    %4 = vector.load %arg3[%c0_2, %c0_3] : memref<16x128xf32, #tpu.memory_space<vmem>>, vector<16x128xf32>
    %cst = arith.constant 1.000000e+00 : f32
    %5 = vector.broadcast %cst : f32 to vector<16x128xf32>
    %6 = arith.cmpf oeq, %4, %5 : vector<16x128xf32>
    %cst_4 = arith.constant 2.500000e-01 : f32
    %cst_5 = arith.constant 7.500000e-01 : f32
    %7 = vector.broadcast %cst_4 : f32 to vector<16x128xf32>
    %8 = vector.broadcast %cst_5 : f32 to vector<16x128xf32>
    %9 = arith.select %6, %7, %8 : vector<16x128xi1>, vector<16x128xf32>
    %10 = math.absf %3 : vector<16x128xf32>
    %cst_6 = arith.constant 0.000000e+00 : f32
    %11 = vector.broadcast %cst_6 : f32 to vector<16x128xf32>
    %12 = arith.subf %11, %10 : vector<16x128xf32>
    %13 = math.exp %12 : vector<16x128xf32>
    %cst_7 = arith.constant 1.000000e+00 : f32
    %14 = vector.broadcast %cst_7 : f32 to vector<16x128xf32>
    %15 = arith.addf %14, %13 : vector<16x128xf32>
    %16 = tpu.reciprocal %15 : vector<16x128xf32> -> vector<16x128xf32>
    %cst_8 = arith.constant 0.000000e+00 : f32
    %17 = vector.broadcast %cst_8 : f32 to vector<16x128xf32>
    %18 = arith.cmpf oge, %3, %17 : vector<16x128xf32>
    %19 = arith.mulf %13, %16 : vector<16x128xf32>
    %20 = arith.select %18, %16, %19 : vector<16x128xi1>, vector<16x128xf32>
    %cst_9 = arith.constant 1.000000e+00 : f32
    %21 = vector.broadcast %cst_9 : f32 to vector<16x128xf32>
    %22 = arith.subf %21, %20 : vector<16x128xf32>
    %23 = arith.select %6, %20, %22 : vector<16x128xi1>, vector<16x128xf32>
    %cst_10 = arith.constant 0.000000e+00 : f32
    %24 = vector.broadcast %cst_10 : f32 to vector<16x128xf32>
    %25 = arith.maximumf %3, %24 : vector<16x128xf32>
    %26 = arith.mulf %3, %4 : vector<16x128xf32>
    %27 = arith.subf %25, %26 : vector<16x128xf32>
    %28 = math.log1p %13 : vector<16x128xf32>
    %29 = arith.addf %27, %28 : vector<16x128xf32>
    %cst_11 = arith.constant 1.000000e+00 : f32
    %30 = vector.broadcast %cst_11 : f32 to vector<16x128xf32>
    %31 = arith.subf %30, %23 : vector<16x128xf32>
    %32 = arith.mulf %31, %31 : vector<16x128xf32>
    %33 = arith.mulf %9, %32 : vector<16x128xf32>
    %34 = arith.mulf %33, %29 : vector<16x128xf32>
    %c0_12 = arith.constant 0 : index
    %c0_13 = arith.constant 0 : index
    %35 = vector.load %arg5[%c0_12, %c0_13] : memref<8x128xf32, #tpu.memory_space<vmem>>, vector<8x128xf32>
    %36 = vector.shape_cast %34 : vector<16x128xf32> to vector<2x8x128xf32>
    %cst_14 = arith.constant dense<0.000000e+00> : vector<8x128xf32>
    %37 = vector.multi_reduction <add>, %36, %cst_14 [0] : vector<2x8x128xf32> to vector<8x128xf32>
    %38 = arith.addf %35, %37 : vector<8x128xf32>
    %c0_15 = arith.constant 0 : index
    %c0_16 = arith.constant 0 : index
    %39 = vector.load %arg5[%c0_15, %c0_16] : memref<8x128xf32, #tpu.memory_space<vmem>>, vector<8x128xf32>
    tpu.vector_store %arg5[%c0_15, %c0_16], %38 {strides = array<i32>} : memref<8x128xf32, #tpu.memory_space<vmem>>, vector<8x128xf32>,
    %c0_i32_17 = arith.constant 0 : i32
    %40 = arith.cmpi eq, %arg1, %c0_i32_17 : i32
    %41 = arith.extui %40 : i1 to i32
    %c0_i32_18 = arith.constant 0 : i32
    %42 = arith.cmpi ne, %41, %c0_i32_18 : i32
    scf.if %42 {
      %c0_19 = arith.constant 0 : index
      %c0_20 = arith.constant 0 : index
      %43 = vector.load %arg5[%c0_19, %c0_20] : memref<8x128xf32, #tpu.memory_space<vmem>>, vector<8x128xf32>
      %c0_21 = arith.constant 0 : index
      %c0_22 = arith.constant 0 : index
      %44 = vector.load %arg4[%c0_21, %c0_22] : memref<8x128xf32, #tpu.memory_space<vmem>>, vector<8x128xf32>
      tpu.vector_store %arg4[%c0_21, %c0_22], %43 {strides = array<i32>} : memref<8x128xf32, #tpu.memory_space<vmem>>, vector<8x128xf32>,
    } else {
    }
    return
  }
  func.func @transform_0(%arg0: i32, %arg1: i32) -> (i32, i32) {
    %c1_i32 = arith.constant 1 : i32
    %0 = arith.muli %arg0, %c1_i32 : i32
    %1 = arith.addi %0, %arg1 : i32
    %c0_i32 = arith.constant 0 : i32
    %c0_i32_0 = arith.constant 0 : i32
    return %1, %c0_i32 : i32, i32
  }
  func.func @transform_1(%arg0: i32, %arg1: i32) -> (i32, i32) {
    %c1_i32 = arith.constant 1 : i32
    %0 = arith.muli %arg0, %c1_i32 : i32
    %1 = arith.addi %0, %arg1 : i32
    %c0_i32 = arith.constant 0 : i32
    %c0_i32_0 = arith.constant 0 : i32
    return %1, %c0_i32 : i32, i32
  }
  func.func @transform_2(%arg0: i32, %arg1: i32) -> (i32, i32) {
    %c0_i32 = arith.constant 0 : i32
    %c0_i32_0 = arith.constant 0 : i32
    return %arg0, %c0_i32 : i32, i32
  }
}

</mosaic_0001>

<bundles_post_ra>
// kernel: tpu_custom_call.1
= control target key start
LH: loop header
LB: loop body
LE: loop exit
PB: predicated region body
PF: predicated region fallthrough
CT: control target
= control target key end

     0   :  { %7 = vsyncpa [#allocation4], 0  ;;  %s303_s0 = inlined_call_operand.hbm [shape: f32[16,128], index: 0, kind: input, shape index: {}]   ;;  %s304_s1 = inlined_call_operand.hbm [shape: f32[16,128], index: 1, kind: input, shape index: {}]   ;;  %s305_s2 = inlined_call_operand.hbm [shape: f32[8,128], index: 2, kind: output, shape index: {}]  }
   0x1   :  { %8 = vsyncpa [#allocation7], 0 }
   0x2   :  { %9 = vsyncpa [#allocation5], 0  ;;  %s236_s9 = smov [#allocation3]   ;;  %s164_s13 = scalar_lea.hbm %s303_s0, 256 }
   0x3   :  { %s19_s10 = sshll.u32 %s236_s9, 4  ;;  %p165_p0 = scmp.ne.s32.totalorder %s303_s0, %s164_s13  ;;  %s20_s10 = int_to_ptr.vmem [resolvable:$true] %s19_s10 }
   0x4   :  { %p168_p1 = scmp.lt.u32.totalorder %s164_s13, %s303_s0 }
   0x6   :  { %p170_p2 = pnand %p168_p1, %p165_p0 }
   0x8   :  { %173 = shalt.err (!%p170_p2)
}
   0x9   :  { %s174_s18 = scalar_lea.vmem %s20_s10, 256  ;;  %p179_p4 = scmp.lt.s32.totalorder %s20_s10, %s20_s10 }
   0xa   :  { %p175_p3 = scmp.ne.s32.totalorder %s20_s10, %s174_s18  ;;  %p180_p5 = scmp.lt.s32.totalorder %s174_s18, %s174_s18 }
   0xc   :  { %p181_p6 = por %p180_p5, %p179_p4 }
   0xe   :  { %p182_p7 = pnand %p181_p6, %p175_p3 }
  0x10   :  { %185 = shalt.err (!%p182_p7)
}
  0x11   :  { %s237_s19 = smov 128   ;;  %s238_s20 = smov 8  }
  0x12   :  { %25 = dma.hbm_to_vmem [thread:$0]  %s303_s0, 256, %s20_s10, [#allocation4], %s237_s19, %s237_s19, %s238_s20  }
  0x13   :  { %s239_s23 = smov [#allocation6]   ;;  %s186_s27 = scalar_lea.hbm %s304_s1, 256 }
  0x14   :  { %s35_s24 = sshll.u32 %s239_s23, 4  ;;  %p187_p8 = scmp.ne.s32.totalorder %s304_s1, %s186_s27  ;;  %s36_s24 = int_to_ptr.vmem [resolvable:$true] %s35_s24 }
  0x15   :  { %p190_p9 = scmp.lt.u32.totalorder %s186_s27, %s304_s1 }
  0x17   :  { %p192_p10 = pnand %p190_p9, %p187_p8 }
  0x19   :  { %195 = shalt.err (!%p192_p10)
}
  0x1a   :  { %s196_s4 = scalar_lea.vmem %s36_s24, 256  ;;  %p201_p12 = scmp.lt.s32.totalorder %s36_s24, %s36_s24 }
  0x1b   :  { %p197_p11 = scmp.ne.s32.totalorder %s36_s24, %s196_s4  ;;  %p202_p13 = scmp.lt.s32.totalorder %s196_s4, %s196_s4 }
  0x1d   :  { %p203_p0 = por %p202_p13, %p201_p12 }
  0x1f   :  { %p204_p1 = pnand %p203_p0, %p197_p11 }
  0x21   :  { %207 = shalt.err (!%p204_p1)
}
  0x22   :  { %41 = dma.hbm_to_vmem [thread:$0]  %s304_s1, 256, %s36_s24, [#allocation7], %s237_s19, %s237_s19, %s238_s20  }
  0x23   :  { %230 = dma.done.wait [#allocation4], 256  }
  0x24   :  { %231 = vsyncadd [#allocation4], 4294967040 }
  0x25   :  { %232 = dma.done.wait [#allocation7], 256  }
  0x26   :  { %233 = vsyncadd [#allocation7], 4294967040  ;;  %v57_v0 = vld [vmem:[#allocation3] sm:$0xff]  ;;  %v58_v1 = vld [vmem:[#allocation3 + $0x8] sm:$0xff]  ;;  %v240_v46 = vmov 0.75   ;;  %s241_s1 = smov [#allocation8]  }
  0x27   :  { %v65_v2 = vand.u32 2147483647, %v57_v0  ;;  %v66_v3 = vand.u32 2147483647, %v58_v1  ;;  %v59_v14 = vld [vmem:[#allocation6] sm:$0xff]  ;;  %v60_v15 = vld [vmem:[#allocation6 + $0x8] sm:$0xff] }
  0x28   :  { %vm61_vm0 = vcmp.eq.f32.partialorder %v59_v14, 1.0  ;;  %vm77_vm1 = vcmp.ge.f32.partialorder %v57_v0, 0.0  ;;  %v89_v20 = vmul.f32 %v59_v14, %v57_v0  ;;  %vm62_vm2 = vcmp.eq.f32.partialorder %v60_v15, 1.0  ;;  %s136_s6 = sshll.u32 %s241_s1, 4  ;;  %s137_s6 = int_to_ptr.vmem [resolvable:$true] %s136_s6 }
  0x29   :  { %v67_v4 = vsub.f32 0.0, %v65_v2  ;;  %v68_v5 = vsub.f32 0.0, %v66_v3  ;;  %vm78_vm3 = vcmp.ge.f32.partialorder %v58_v1, 0.0  ;;  %v87_v24 = vmax.f32 %v57_v0, 0.0  ;;  %s208_s7 = scalar_lea.vmem %s137_s6, 128  ;;  %p213_p3 = scmp.lt.s32.totalorder %s137_s6, %s137_s6 }
  0x2a   :  { %v88_v27 = vmax.f32 %v58_v1, 0.0  ;;  %v90_v28 = vmul.f32 %v60_v15, %v58_v1  ;;  %v63_v47 = vsel %vm61_vm0, 0.25, %v240_v46  ;;  %v64_v49 = vsel %vm62_vm2, 0.25, %v240_v46  ;;  %p209_p2 = scmp.ne.s32.totalorder %s137_s6, %s208_s7  ;;  %p214_p4 = scmp.lt.s32.totalorder %s208_s7, %s208_s7 }
  0x2b   :  { %v69_v6 = vmul.f32 1.442695, %v67_v4  ;;  %v71_v7 = vmul.f32 1.442695, %v68_v5  ;;  %v91_v39 = vsub.f32 %v87_v24, %v89_v20 }
  0x2c   :  { %v92_v41 = vsub.f32 %v88_v27, %v90_v28  ;;  %p215_p5 = por %p214_p4, %p213_p3 }
  0x2d   :  { %152 = vpow2.f32 %v69_v6 }
  0x2e   :  { %154 = vpow2.f32 %v71_v7  ;;  %p216_p6 = pnand %p215_p5, %p209_p2 }
  0x37   :  { %v153_v8 = vpop.eup %152 }
  0x38   :  { %v155_v9 = vpop.eup %154  ;;  %v73_v10 = vadd.f32 1.0, %v153_v8  ;;  %v96_v12 = vmul.f32 -0.5, %v153_v8  ;;  %v99_v17 = vand.u32 2147483647, %v153_v8 }
  0x39   :  { %v74_v11 = vadd.f32 1.0, %v155_v9  ;;  %v105_v13 = vmul.f32 -0.5, %v155_v9  ;;  %v108_v21 = vand.u32 2147483647, %v155_v9 }
  0x3a   :  { %156 = vrcp.f32 %v73_v10  ;;  %v97_v16 = vadd.f32 1.0, %v96_v12  ;;  %vm281_vm4 = vcmp.lt.f32.partialorder %v99_v17, 0.0004427343 }
  0x3b   :  { %158 = vrcp.f32 %v74_v11  ;;  %v106_v18 = vadd.f32 1.0, %v105_v13  ;;  %vm109_vm5 = vcmp.lt.f32.partialorder %v108_v21, 0.0004427343 }
  0x3c   :  { %160 = vlog2.f32 %v73_v10  ;;  %v98_v29 = vmul.f32 %v153_v8, %v97_v16 }
  0x3d   :  { %162 = vlog2.f32 %v74_v11  ;;  %v107_v34 = vmul.f32 %v155_v9, %v106_v18 }
  0x44   :  { %v157_v19 = vpop.eup %156 }
  0x45   :  { %v159_v22 = vpop.eup %158  ;;  %v79_v23 = vmul.f32 %v157_v19, %v153_v8 }
  0x46   :  { %v161_v25 = vpop.eup %160  ;;  %v80_v26 = vmul.f32 %v159_v22, %v155_v9 }
  0x47   :  { %v163_v30 = vpop.eup %162  ;;  %v81_v31 = vsel %vm77_vm1, %v157_v19, %v79_v23  ;;  %v95_v32 = vmul.f32 0.6931472, %v161_v25 }
  0x48   :  { %v82_v35 = vsel %vm78_vm3, %v159_v22, %v80_v26  ;;  %v83_v36 = vsub.f32 1.0, %v81_v31  ;;  %v104_v37 = vmul.f32 0.6931472, %v163_v30 }
  0x49   :  { %v84_v38 = vsub.f32 1.0, %v82_v35  ;;  %v101_v42 = vsel %vm281_vm4, %v98_v29, %v95_v32 }
  0x4a   :  { %v85_v40 = vsel %vm61_vm0, %v81_v31, %v83_v36  ;;  %v110_v44 = vsel %vm109_vm5, %v107_v34, %v104_v37  ;;  %v111_v50 = vadd.f32 %v101_v42, %v91_v39 }
  0x4b   :  { %v86_v43 = vsel %vm62_vm2, %v82_v35, %v84_v38  ;;  %v113_v45 = vsub.f32 1.0, %v85_v40  ;;  %v112_v52 = vadd.f32 %v110_v44, %v92_v41 }
  0x4c   :  { %v114_v48 = vsub.f32 1.0, %v86_v43 }
  0x4d   :  { %v115_v51 = vmul.f32 %v113_v45, %v113_v45 }
  0x4e   :  { %v116_v53 = vmul.f32 %v114_v48, %v114_v48 }
  0x4f   :  { %v117_v54 = vmul.f32 %v115_v51, %v63_v47 }
  0x50   :  { %v118_v55 = vmul.f32 %v116_v53, %v64_v49 }
  0x51   :  { %v119_v56 = vmul.f32 %v117_v54, %v111_v50 }
  0x52   :  { %v120_v57 = vmul.f32 %v118_v55, %v112_v52 }
  0x54   :  { %v122_v58 = vadd.f32 %v120_v57, %v119_v56 }
  0x56   :  { %129 = vst [vmem:[#allocation8] sm:$0xff] %v122_v58 }
  0x57   :  { %219 = shalt.err (!%p216_p6)
}
  0x58   :  { %s220_s10 = scalar_lea.hbm %s305_s2, 128 }
  0x59   :  { %p221_p7 = scmp.ne.s32.totalorder %s305_s2, %s220_s10  ;;  %p224_p8 = scmp.lt.u32.totalorder %s220_s10, %s305_s2 }
  0x5b   :  { %p226_p9 = pnand %p224_p8, %p221_p7 }
  0x5d   :  { %229 = shalt.err (!%p226_p9)
}
  0x5e   :  { %139 = dma.vmem_to_hbm [thread:$0]  %s137_s6, 128, %s305_s2, [#allocation5]  }
  0x5f   :  { %234 = dma.done.wait [#allocation5], 128  }
  0x60   :  { %235 = vsyncadd [#allocation5], 4294967168 }
  0x61   :  { %143 = vsyncpa [#allocation4], 1 }
  0x62   :  { %144 = vsyncpa [#allocation7], 1 }
  0x63   :  { %145 = vsyncpa [#allocation5], 1 }

</bundles_post_ra>
